<compile_context>
chip_gen: v7x
topology: tpu7x:2x2x1
jax: 0.10.0
libtpu: 0.0.40
codegen_flags: <defaults>
</compile_context>

<pallas_src>
import jax
import jax.numpy as jnp
from jax import lax
from jax.experimental import pallas as pl
from jax.experimental.pallas import tpu as pltpu


def _round_up(x, m):
    return (x + m - 1) // m * m


# ----------------------------------------------------------------------------
# Kernels
# ----------------------------------------------------------------------------
def _fasttext_fused_kernel(x_ref, invlen_ref, ew_ref, b_ref, out_ref):
    """Inference path: logits = (counts @ (E @ W)) * (1/len) + b -> log_softmax."""
    TB, S = x_ref.shape                     # batch tile, 2*L (p-ids ++ shifted v-ids)
    V = ew_ref.shape[0]                     # padded Vp + Vv

    x = x_ref[...]                                                   # [TB, S] int32
    iota_v = lax.broadcasted_iota(jnp.int32, (TB, V), 1)             # [TB, V]

    # 2-D accumulating one-hot counts; f32 accumulation, single cast at the MXU.
    counts = jnp.zeros((TB, V), jnp.float32)
    for l in range(S):
        counts = counts + (x[:, l:l + 1] == iota_v).astype(jnp.float32)

    # Single lane-dense matmul against the fused [V, O_pad] table.
    logits = jnp.dot(counts.astype(ew_ref.dtype), ew_ref[...],
                     preferred_element_type=jnp.float32)
    logits = logits * invlen_ref[...] + b_ref[...]                   # [TB, O_pad]

    # log_softmax; padded columns carry a -1e30 bias -> exp(.) == 0.
    m = jnp.max(logits, axis=-1, keepdims=True)
    z = logits - m
    lse = jnp.log(jnp.sum(jnp.exp(z), axis=-1, keepdims=True))
    out_ref[...] = z - lse


def _fasttext_dropout_kernel(x_ref, mask_ref, emb_ref, w_ref, b_ref, out_ref):
    """Training path: dropout acts on hidden, so E and W cannot be fused."""
    TB, S = x_ref.shape
    V = emb_ref.shape[0]

    x = x_ref[...]
    iota_v = lax.broadcasted_iota(jnp.int32, (TB, V), 1)
    counts = jnp.zeros((TB, V), jnp.float32)
    for l in range(S):
        counts = counts + (x[:, l:l + 1] == iota_v).astype(jnp.float32)

    # mask_ref already carries (keep / (1 - p)) * (1 / x_len) -> one multiply.
    hidden = jnp.dot(counts.astype(emb_ref.dtype), emb_ref[...],
                     preferred_element_type=jnp.float32) * mask_ref[...]
    logits = jnp.dot(hidden.astype(w_ref.dtype), w_ref[...],
                     preferred_element_type=jnp.float32) + b_ref[...]

    m = jnp.max(logits, axis=-1, keepdims=True)
    z = logits - m
    lse = jnp.log(jnp.sum(jnp.exp(z), axis=-1, keepdims=True))
    out_ref[...] = z - lse


# ----------------------------------------------------------------------------
# Parameter packing (one time, at model init)
# ----------------------------------------------------------------------------
def pack_fasttext_params(p_emb, v_emb, w, b, *, dropout_rate=0.0,
                         table_dtype=jnp.bfloat16):
    """Hoisted out of the per-call path: pack / pad / (optionally) fuse weights."""
    Vp, Dp = p_emb.shape
    Vv, Dv = v_emb.shape
    H = Dp + Dv
    V = Vp + Vv
    O = w.shape[-1]
    V_pad = _round_up(V, 128)
    H_pad = _round_up(H, 128)
    O_pad = _round_up(O, 128)

    # Padded output columns get a -1e30 bias so they vanish inside log_softmax.
    b_pad = jnp.full((1, O_pad), -1e30, jnp.float32)
    b_pad = b_pad.at[:, :O].set(b.reshape(1, O).astype(jnp.float32))

    params = dict(dropout_rate=float(dropout_rate),
                  dims=(Vp, Vv, Dp, Dv, H, O),
                  pads=(V_pad, H_pad, O_pad),
                  b=b_pad)

    if dropout_rate > 0.0:
        # Block-diagonal embedding table + padded linear weight (two matmuls).
        emb = jnp.zeros((V_pad, H_pad), table_dtype)
        emb = emb.at[:Vp, :Dp].set(p_emb.astype(table_dtype))
        emb = emb.at[Vp:V, Dp:H].set(v_emb.astype(table_dtype))
        w_pad = jnp.zeros((H_pad, O_pad), table_dtype)
        w_pad = w_pad.at[:H, :O].set(w.astype(table_dtype))
        params.update(emb=emb, w=w_pad)
    else:
        # Fused inference table: sum_l E[x_l] @ W == counts @ (E @ W).
        # Built in f32, cast once to bf16; same VMEM as [V, H] after lane
        # padding but one lane-dense (K=V, N=O_pad) matmul in the kernel.
        ew = jnp.zeros((V_pad, O_pad), jnp.float32)
        ew = ew.at[:Vp, :O].set(p_emb.astype(jnp.float32) @ w[:Dp].astype(jnp.float32))
        ew = ew.at[Vp:V, :O].set(v_emb.astype(jnp.float32) @ w[Dp:H].astype(jnp.float32))
        params.update(ew=ew.astype(table_dtype))

    # TODO(synk): for very large vocabularies the [V_pad, *] table cannot stay
    # VMEM-resident (esp. 64 MiB/TC parts); tile V as an "arbitrary" reduction
    # grid axis with a VMEM accumulator, or switch to a gather-based path.
    return params


def _vmem_limit_bytes(TB, S, V_pad, H_pad, O_pad, *, fused):
    lane = lambda n: _round_up(max(int(n), 1), 128)
    est = 0
    est += 2 * TB * lane(S) * 4            # token ids (double-buffered)
    est += 2 * TB * O_pad * 4              # output tile (double-buffered)
    est += 8 * O_pad * 4                   # bias (single-buffered)
    if fused:
        est += 2 * TB * lane(1) * 4        # 1/len (double-buffered)
        est += V_pad * O_pad * 2           # fused E@W table (single-buffered)
    else:
        est += 2 * TB * H_pad * 4          # dropout mask (double-buffered)
        est += V_pad * H_pad * 2           # emb table (single-buffered)
        est += H_pad * O_pad * 2           # linear weight (single-buffered)
    est += 3 * TB * V_pad * 4              # counts / iota temporaries
    est += 3 * TB * O_pad * 4              # logits / softmax temporaries
    return int(min(64 << 20, max(32 << 20, est * 2)))


# ----------------------------------------------------------------------------
# Forward
# ----------------------------------------------------------------------------
def fasttext_forward(params, x_p, x_v, x_len, *, dropout_key=None,
                     batch_tile=256):
    B, L = x_p.shape
    Vp, Vv, Dp, Dv, H, O = params["dims"]
    V_pad, H_pad, O_pad = params["pads"]
    p = params["dropout_rate"]
    S = 2 * L

    # Fuse property/value id spaces (values shifted by Vp -> block-diag table).
    x_comb = jnp.concatenate([x_p.astype(jnp.int32),
                              x_v.astype(jnp.int32) + Vp], axis=1)   # [B, 2L]

    # Note: x_len must be >= 1 (same contract as the torch module).
    inv_len = 1.0 / x_len.reshape(B, 1).astype(jnp.float32)          # [B, 1]

    # Sublane-aligned batch tiling + padding (padded rows are sliced away).
    TB = min(int(batch_tile), _round_up(B, 8))
    B_pad = _round_up(B, TB)
    pad_b = B_pad - B
    if pad_b:
        x_comb = jnp.pad(x_comb, ((0, pad_b), (0, 0)))
        inv_len = jnp.pad(inv_len, ((0, pad_b), (0, 0)), constant_values=1.0)

    grid = (B_pad // TB,)
    out_spec = pl.BlockSpec((TB, O_pad), lambda i: (i, 0))
    out_shape = jax.ShapeDtypeStruct((B_pad, O_pad), jnp.float32)

    def resident(shape):
        # Constant index_map -> fetched once; single-buffer to halve its VMEM.
        return pl.BlockSpec(shape, lambda i: (0, 0), pipeline_mode=pl.Buffered(1))

    if p > 0.0:
        if dropout_key is None:
            raise ValueError("dropout_key is required when dropout_rate > 0")
        # TODO(synk): mask comes from jax.random, so it never matches torch's
        # F.dropout RNG stream bit-for-bit.
        keep = jax.random.bernoulli(dropout_key, 1.0 - p, (B, H))
        mask = keep.astype(jnp.float32) * (1.0 / (1.0 - p)) * inv_len[:B]
        mask = jnp.zeros((B_pad, H_pad), jnp.float32).at[:B, :H].set(mask)

        grid_spec = pltpu.PrefetchScalarGridSpec(
            num_scalar_prefetch=0, grid=grid,
            in_specs=[
                pl.BlockSpec((TB, S), lambda i: (i, 0)),      # token ids (tiled)
                pl.BlockSpec((TB, H_pad), lambda i: (i, 0)),  # dropout*1/len mask
                resident((V_pad, H_pad)),                     # emb table
                resident((H_pad, O_pad)),                     # fcn weight
                resident((1, O_pad)),                         # fcn bias
            ],
            out_specs=out_spec)
        out = pl.pallas_call(
            _fasttext_dropout_kernel,
            out_shape=out_shape,
            grid_spec=grid_spec,
            compiler_params=pltpu.CompilerParams(
                dimension_semantics=("parallel",),
                vmem_limit_bytes=_vmem_limit_bytes(TB, S, V_pad, H_pad, O_pad,
                                                   fused=False)),
        )(x_comb, mask, params["emb"], params["w"], params["b"])
    else:
        grid_spec = pltpu.PrefetchScalarGridSpec(
            num_scalar_prefetch=0, grid=grid,
            in_specs=[
                pl.BlockSpec((TB, S), lambda i: (i, 0)),      # token ids (tiled)
                pl.BlockSpec((TB, 1), lambda i: (i, 0)),      # 1 / x_len (tiled)
                resident((V_pad, O_pad)),                     # fused E@W table
                resident((1, O_pad)),                         # fcn bias
            ],
            out_specs=out_spec)
        out = pl.pallas_call(
            _fasttext_fused_kernel,
            out_shape=out_shape,
            grid_spec=grid_spec,
            compiler_params=pltpu.CompilerParams(
                dimension_semantics=("parallel",),
                vmem_limit_bytes=_vmem_limit_bytes(TB, S, V_pad, H_pad, O_pad,
                                                   fused=True)),
        )(x_comb, inv_len, params["ew"], params["b"])

    return out[:B, :O]


# ----------------------------------------------------------------------------
# Pure-JAX reference + smoke test
# ----------------------------------------------------------------------------
def _reference(x_p, x_v, x_len, p_emb, v_emb, w, b):
    embed_p = p_emb[x_p]                      # [B, L, Dp]
    embed_v = v_emb[x_v]                      # [B, L, Dv]
    embed = jnp.concatenate([embed_p, embed_v], axis=-1)
    hidden = embed.sum(axis=1) / x_len.astype(jnp.float32)
    logits = hidden @ w + b.reshape(1, -1)
    return jax.nn.log_softmax(logits, axis=-1)


if __name__ == "__main__":
    key = jax.random.PRNGKey(0)
    k1, k2, k3, k4, k5, k6, k7 = jax.random.split(key, 7)

    B, L = 4, 8            # batch, seq_max_len
    Vp, Vv = 32, 40        # property / value vocab sizes
    Dp, Dv = 16, 16        # embedding dims -> hidden_size = Dp + Dv
    O = 8                  # output_size (number of Lifestyles)

    p_emb = jax.random.normal(k1, (Vp, Dp), jnp.float32) * 0.1
    v_emb = jax.random.normal(k2, (Vv, Dv), jnp.float32) * 0.1
    w = jax.random.normal(k3, (Dp + Dv, O), jnp.float32) * 0.1   # fcn.weight.T
    b = jax.random.normal(k4, (1, O), jnp.float32) * 0.1         # fcn.bias

    x_p = jax.random.randint(k5, (B, L), 0, Vp, dtype=jnp.int32)
    x_v = jax.random.randint(k6, (B, L), 0, Vv, dtype=jnp.int32)
    x_len = jax.random.randint(k7, (B, 1), 1, L + 1, dtype=jnp.int32)

    # Inference path (dropout off, fused E@W) vs. pure-JAX f32 reference.
    params_inf = pack_fasttext_params(p_emb, v_emb, w, b, dropout_rate=0.0)
    out = fasttext_forward(params_inf, x_p, x_v, x_len)
    jax.block_until_ready(out)

    ref = _reference(x_p, x_v, x_len, p_emb, v_emb, w, b)
    assert out.shape == (B, O) and out.dtype == jnp.float32
    # bf16 fused table -> small rounding vs. the f32 reference.
    assert jnp.allclose(out, ref, atol=2e-2, rtol=2e-2), "mismatch vs reference"

    # Dropout path (host-side jax.random mask; stochastic -> check the rows
    # are valid, finite log-prob vectors).
    params_do = pack_fasttext_params(p_emb, v_emb, w, b, dropout_rate=0.25)
    out_do = fasttext_forward(params_do, x_p, x_v, x_len,
                              dropout_key=jax.random.PRNGKey(123))
    jax.block_until_ready(out_do)
    assert out_do.shape == (B, O)
    assert bool(jnp.all(jnp.isfinite(out_do)))
    assert jnp.allclose(jnp.sum(jnp.exp(out_do), axis=-1), 1.0, atol=1e-3)

    print("KERNEL_OK")
</pallas_src>

<mosaic_0001>
module attributes {stable_mosaic.version = 11 : i64} {
  func.func @_fasttext_fused_kernel(%arg0: i32, %arg1: memref<8x16xi32, #tpu.memory_space<vmem>>, %arg2: memref<8x1xf32, #tpu.memory_space<vmem>>, %arg3: memref<128x128xbf16, #tpu.memory_space<vmem>>, %arg4: memref<1x128xf32, #tpu.memory_space<vmem>>, %arg5: memref<8x128xf32, #tpu.memory_space<vmem>>) attributes {dimension_semantics = [#tpu.dimension_semantics<parallel>], iteration_bounds = array<i64: 1>, scalar_prefetch = 0 : i64, scratch_operands = 0 : i64, tpu.core_type = #tpu.core_type<tc>, window_params = [{transform_indices = @transform_0, window_bounds = array<i64: 8, 16>}, {transform_indices = @transform_1, window_bounds = array<i64: 8, 1>}, {pipeline_mode = #tpu.pipeline_mode<synchronous>, transform_indices = @transform_2, window_bounds = array<i64: 128, 128>}, {pipeline_mode = #tpu.pipeline_mode<synchronous>, transform_indices = @transform_3, window_bounds = array<i64: 1, 128>}, {transform_indices = @transform_4, window_bounds = array<i64: 8, 128>}]} {
    %c0 = arith.constant 0 : index
    %c0_0 = arith.constant 0 : index
    %0 = vector.load %arg1[%c0, %c0_0] : memref<8x16xi32, #tpu.memory_space<vmem>>, vector<8x16xi32>
    %1 = tpu.iota {dimensions = array<i32: 1>} : vector<8x128xi32>
    %cst = arith.constant 0.000000e+00 : f32
    %2 = vector.broadcast %cst : f32 to vector<8x128xf32>
    %3 = vector.extract_strided_slice %0 {offsets = [0, 0], sizes = [8, 1], strides = [1, 1]} : vector<8x16xi32> to vector<8x1xi32>
    %4 = vector.broadcast %3 : vector<8x1xi32> to vector<8x128xi32>
    %5 = arith.cmpi eq, %4, %1 : vector<8x128xi32>
    %6 = arith.extui %5 : vector<8x128xi1> to vector<8x128xi32>
    %7 = arith.sitofp %6 : vector<8x128xi32> to vector<8x128xf32>
    %8 = arith.addf %2, %7 : vector<8x128xf32>
    %9 = vector.extract_strided_slice %0 {offsets = [0, 1], sizes = [8, 1], strides = [1, 1]} : vector<8x16xi32> to vector<8x1xi32>
    %10 = vector.broadcast %9 : vector<8x1xi32> to vector<8x128xi32>
    %11 = arith.cmpi eq, %10, %1 : vector<8x128xi32>
    %12 = arith.extui %11 : vector<8x128xi1> to vector<8x128xi32>
    %13 = arith.sitofp %12 : vector<8x128xi32> to vector<8x128xf32>
    %14 = arith.addf %8, %13 : vector<8x128xf32>
    %15 = vector.extract_strided_slice %0 {offsets = [0, 2], sizes = [8, 1], strides = [1, 1]} : vector<8x16xi32> to vector<8x1xi32>
    %16 = vector.broadcast %15 : vector<8x1xi32> to vector<8x128xi32>
    %17 = arith.cmpi eq, %16, %1 : vector<8x128xi32>
    %18 = arith.extui %17 : vector<8x128xi1> to vector<8x128xi32>
    %19 = arith.sitofp %18 : vector<8x128xi32> to vector<8x128xf32>
    %20 = arith.addf %14, %19 : vector<8x128xf32>
    %21 = vector.extract_strided_slice %0 {offsets = [0, 3], sizes = [8, 1], strides = [1, 1]} : vector<8x16xi32> to vector<8x1xi32>
    %22 = vector.broadcast %21 : vector<8x1xi32> to vector<8x128xi32>
    %23 = arith.cmpi eq, %22, %1 : vector<8x128xi32>
    %24 = arith.extui %23 : vector<8x128xi1> to vector<8x128xi32>
    %25 = arith.sitofp %24 : vector<8x128xi32> to vector<8x128xf32>
    %26 = arith.addf %20, %25 : vector<8x128xf32>
    %27 = vector.extract_strided_slice %0 {offsets = [0, 4], sizes = [8, 1], strides = [1, 1]} : vector<8x16xi32> to vector<8x1xi32>
    %28 = vector.broadcast %27 : vector<8x1xi32> to vector<8x128xi32>
    %29 = arith.cmpi eq, %28, %1 : vector<8x128xi32>
    %30 = arith.extui %29 : vector<8x128xi1> to vector<8x128xi32>
    %31 = arith.sitofp %30 : vector<8x128xi32> to vector<8x128xf32>
    %32 = arith.addf %26, %31 : vector<8x128xf32>
    %33 = vector.extract_strided_slice %0 {offsets = [0, 5], sizes = [8, 1], strides = [1, 1]} : vector<8x16xi32> to vector<8x1xi32>
    %34 = vector.broadcast %33 : vector<8x1xi32> to vector<8x128xi32>
    %35 = arith.cmpi eq, %34, %1 : vector<8x128xi32>
    %36 = arith.extui %35 : vector<8x128xi1> to vector<8x128xi32>
    %37 = arith.sitofp %36 : vector<8x128xi32> to vector<8x128xf32>
    %38 = arith.addf %32, %37 : vector<8x128xf32>
    %39 = vector.extract_strided_slice %0 {offsets = [0, 6], sizes = [8, 1], strides = [1, 1]} : vector<8x16xi32> to vector<8x1xi32>
    %40 = vector.broadcast %39 : vector<8x1xi32> to vector<8x128xi32>
    %41 = arith.cmpi eq, %40, %1 : vector<8x128xi32>
    %42 = arith.extui %41 : vector<8x128xi1> to vector<8x128xi32>
    %43 = arith.sitofp %42 : vector<8x128xi32> to vector<8x128xf32>
    %44 = arith.addf %38, %43 : vector<8x128xf32>
    %45 = vector.extract_strided_slice %0 {offsets = [0, 7], sizes = [8, 1], strides = [1, 1]} : vector<8x16xi32> to vector<8x1xi32>
    %46 = vector.broadcast %45 : vector<8x1xi32> to vector<8x128xi32>
    %47 = arith.cmpi eq, %46, %1 : vector<8x128xi32>
    %48 = arith.extui %47 : vector<8x128xi1> to vector<8x128xi32>
    %49 = arith.sitofp %48 : vector<8x128xi32> to vector<8x128xf32>
    %50 = arith.addf %44, %49 : vector<8x128xf32>
    %51 = vector.extract_strided_slice %0 {offsets = [0, 8], sizes = [8, 1], strides = [1, 1]} : vector<8x16xi32> to vector<8x1xi32>
    %52 = vector.broadcast %51 : vector<8x1xi32> to vector<8x128xi32>
    %53 = arith.cmpi eq, %52, %1 : vector<8x128xi32>
    %54 = arith.extui %53 : vector<8x128xi1> to vector<8x128xi32>
    %55 = arith.sitofp %54 : vector<8x128xi32> to vector<8x128xf32>
    %56 = arith.addf %50, %55 : vector<8x128xf32>
    %57 = vector.extract_strided_slice %0 {offsets = [0, 9], sizes = [8, 1], strides = [1, 1]} : vector<8x16xi32> to vector<8x1xi32>
    %58 = vector.broadcast %57 : vector<8x1xi32> to vector<8x128xi32>
    %59 = arith.cmpi eq, %58, %1 : vector<8x128xi32>
    %60 = arith.extui %59 : vector<8x128xi1> to vector<8x128xi32>
    %61 = arith.sitofp %60 : vector<8x128xi32> to vector<8x128xf32>
    %62 = arith.addf %56, %61 : vector<8x128xf32>
    %63 = vector.extract_strided_slice %0 {offsets = [0, 10], sizes = [8, 1], strides = [1, 1]} : vector<8x16xi32> to vector<8x1xi32>
    %64 = vector.broadcast %63 : vector<8x1xi32> to vector<8x128xi32>
    %65 = arith.cmpi eq, %64, %1 : vector<8x128xi32>
    %66 = arith.extui %65 : vector<8x128xi1> to vector<8x128xi32>
    %67 = arith.sitofp %66 : vector<8x128xi32> to vector<8x128xf32>
    %68 = arith.addf %62, %67 : vector<8x128xf32>
    %69 = vector.extract_strided_slice %0 {offsets = [0, 11], sizes = [8, 1], strides = [1, 1]} : vector<8x16xi32> to vector<8x1xi32>
    %70 = vector.broadcast %69 : vector<8x1xi32> to vector<8x128xi32>
    %71 = arith.cmpi eq, %70, %1 : vector<8x128xi32>
    %72 = arith.extui %71 : vector<8x128xi1> to vector<8x128xi32>
    %73 = arith.sitofp %72 : vector<8x128xi32> to vector<8x128xf32>
    %74 = arith.addf %68, %73 : vector<8x128xf32>
    %75 = vector.extract_strided_slice %0 {offsets = [0, 12], sizes = [8, 1], strides = [1, 1]} : vector<8x16xi32> to vector<8x1xi32>
    %76 = vector.broadcast %75 : vector<8x1xi32> to vector<8x128xi32>
    %77 = arith.cmpi eq, %76, %1 : vector<8x128xi32>
    %78 = arith.extui %77 : vector<8x128xi1> to vector<8x128xi32>
    %79 = arith.sitofp %78 : vector<8x128xi32> to vector<8x128xf32>
    %80 = arith.addf %74, %79 : vector<8x128xf32>
    %81 = vector.extract_strided_slice %0 {offsets = [0, 13], sizes = [8, 1], strides = [1, 1]} : vector<8x16xi32> to vector<8x1xi32>
    %82 = vector.broadcast %81 : vector<8x1xi32> to vector<8x128xi32>
    %83 = arith.cmpi eq, %82, %1 : vector<8x128xi32>
    %84 = arith.extui %83 : vector<8x128xi1> to vector<8x128xi32>
    %85 = arith.sitofp %84 : vector<8x128xi32> to vector<8x128xf32>
    %86 = arith.addf %80, %85 : vector<8x128xf32>
    %87 = vector.extract_strided_slice %0 {offsets = [0, 14], sizes = [8, 1], strides = [1, 1]} : vector<8x16xi32> to vector<8x1xi32>
    %88 = vector.broadcast %87 : vector<8x1xi32> to vector<8x128xi32>
    %89 = arith.cmpi eq, %88, %1 : vector<8x128xi32>
    %90 = arith.extui %89 : vector<8x128xi1> to vector<8x128xi32>
    %91 = arith.sitofp %90 : vector<8x128xi32> to vector<8x128xf32>
    %92 = arith.addf %86, %91 : vector<8x128xf32>
    %93 = vector.extract_strided_slice %0 {offsets = [0, 15], sizes = [8, 1], strides = [1, 1]} : vector<8x16xi32> to vector<8x1xi32>
    %94 = vector.broadcast %93 : vector<8x1xi32> to vector<8x128xi32>
    %95 = arith.cmpi eq, %94, %1 : vector<8x128xi32>
    %96 = arith.extui %95 : vector<8x128xi1> to vector<8x128xi32>
    %97 = arith.sitofp %96 : vector<8x128xi32> to vector<8x128xf32>
    %98 = arith.addf %92, %97 : vector<8x128xf32>
    %99 = arith.truncf %98 : vector<8x128xf32> to vector<8x128xbf16>
    %c0_1 = arith.constant 0 : index
    %c0_2 = arith.constant 0 : index
    %100 = vector.load %arg3[%c0_1, %c0_2] : memref<128x128xbf16, #tpu.memory_space<vmem>>, vector<128x128xbf16>
    %cst_3 = arith.constant dense<0.000000e+00> : vector<8x128xf32>
    %101 = tpu.matmul %99, %100, %cst_3 {dimension_numbers = #tpu.dot_dimension_numbers<[1], [0], [0], [1], [0, 0, 1, 1], [], []>} : vector<8x128xbf16>, vector<128x128xbf16>, vector<8x128xf32> -> vector<8x128xf32>
    %c0_4 = arith.constant 0 : index
    %c0_5 = arith.constant 0 : index
    %102 = vector.load %arg2[%c0_4, %c0_5] : memref<8x1xf32, #tpu.memory_space<vmem>>, vector<8x1xf32>
    %103 = vector.broadcast %102 : vector<8x1xf32> to vector<8x128xf32>
    %104 = arith.mulf %101, %103 : vector<8x128xf32>
    %c0_6 = arith.constant 0 : index
    %c0_7 = arith.constant 0 : index
    %105 = vector.load %arg4[%c0_6, %c0_7] : memref<1x128xf32, #tpu.memory_space<vmem>>, vector<1x128xf32>
    %106 = vector.broadcast %105 : vector<1x128xf32> to vector<8x128xf32>
    %107 = arith.addf %104, %106 : vector<8x128xf32>
    %cst_8 = arith.constant dense<0xFF800000> : vector<8xf32>
    %108 = vector.multi_reduction <maximumf>, %107, %cst_8 [1] : vector<8x128xf32> to vector<8xf32>
    %109 = vector.shape_cast %108 : vector<8xf32> to vector<8x1xf32>
    %110 = vector.broadcast %109 : vector<8x1xf32> to vector<8x128xf32>
    %111 = arith.subf %107, %110 : vector<8x128xf32>
    %112 = math.exp %111 : vector<8x128xf32>
    %cst_9 = arith.constant dense<0.000000e+00> : vector<8xf32>
    %113 = vector.multi_reduction <add>, %112, %cst_9 [1] : vector<8x128xf32> to vector<8xf32>
    %114 = vector.shape_cast %113 : vector<8xf32> to vector<8x1xf32>
    %115 = math.log %114 : vector<8x1xf32>
    %116 = vector.broadcast %115 : vector<8x1xf32> to vector<8x128xf32>
    %117 = arith.subf %111, %116 : vector<8x128xf32>
    %c0_10 = arith.constant 0 : index
    %c0_11 = arith.constant 0 : index
    %118 = vector.load %arg5[%c0_10, %c0_11] : memref<8x128xf32, #tpu.memory_space<vmem>>, vector<8x128xf32>
    tpu.vector_store %arg5[%c0_10, %c0_11], %117 {strides = array<i32>} : memref<8x128xf32, #tpu.memory_space<vmem>>, vector<8x128xf32>,
    return
  }
  func.func @transform_0(%arg0: i32) -> (i32, i32) {
    %c0_i32 = arith.constant 0 : i32
    %c0_i32_0 = arith.constant 0 : i32
    return %arg0, %c0_i32 : i32, i32
  }
  func.func @transform_1(%arg0: i32) -> (i32, i32) {
    %c0_i32 = arith.constant 0 : i32
    %c0_i32_0 = arith.constant 0 : i32
    return %arg0, %c0_i32 : i32, i32
  }
  func.func @transform_2(%arg0: i32) -> (i32, i32) {
    %c0_i32 = arith.constant 0 : i32
    %c0_i32_0 = arith.constant 0 : i32
    %c0_i32_1 = arith.constant 0 : i32
    return %c0_i32, %c0_i32_0 : i32, i32
  }
  func.func @transform_3(%arg0: i32) -> (i32, i32) {
    %c0_i32 = arith.constant 0 : i32
    %c0_i32_0 = arith.constant 0 : i32
    %c0_i32_1 = arith.constant 0 : i32
    return %c0_i32, %c0_i32_0 : i32, i32
  }
  func.func @transform_4(%arg0: i32) -> (i32, i32) {
    %c0_i32 = arith.constant 0 : i32
    %c0_i32_0 = arith.constant 0 : i32
    return %arg0, %c0_i32 : i32, i32
  }
}

</mosaic_0001>

<bundles_post_ra>
// kernel: tpu_custom_call.1
= control target key start
LH: loop header
LB: loop body
LE: loop exit
PB: predicated region body
PF: predicated region fallthrough
CT: control target
= control target key end

     0   :  { %9 = vsyncpa [#allocation3], 0  ;;  %s592_s0 = inlined_call_operand.vmem [shape: s32[8,16], index: 0, kind: input, shape index: {}]   ;;  %s593_s1 = inlined_call_operand.vmem [shape: f32[8,1], index: 1, kind: input, shape index: {}]   ;;  %s594_s2 = inlined_call_operand.hbm [shape: bf16[128,128], index: 2, kind: input, shape index: {}]   ;;  %s595_s3 = inlined_call_operand.vmem [shape: f32[1,128], index: 3, kind: input, shape index: {}]   ;;  %s596_s4 = inlined_call_operand.hbm [shape: f32[8,128], index: 4, kind: output, shape index: {}]  }
   0x1   :  { %10 = vsyncpa [#allocation4], 0  ;;  %s448_s15 = smov [#allocation2]   ;;  %s400_s19 = scalar_lea.hbm %s594_s2, 1024 }
   0x2   :  { %s20_s16 = sshll.u32 %s448_s15, 4  ;;  %p401_p0 = scmp.ne.s32.totalorder %s594_s2, %s400_s19  ;;  %s21_s16 = int_to_ptr.vmem [resolvable:$true] %s20_s16 }
   0x3   :  { %p404_p1 = scmp.lt.u32.totalorder %s400_s19, %s594_s2 }
   0x5   :  { %p406_p2 = pnand %p404_p1, %p401_p0 }
   0x7   :  { %409 = shalt.err (!%p406_p2)
}
   0x8   :  { %s410_s24 = scalar_lea.vmem %s21_s16, 1024  ;;  %p415_p4 = scmp.lt.s32.totalorder %s21_s16, %s21_s16 }
   0x9   :  { %p411_p3 = scmp.ne.s32.totalorder %s21_s16, %s410_s24  ;;  %p416_p5 = scmp.lt.s32.totalorder %s410_s24, %s410_s24 }
   0xb   :  { %p417_p6 = por %p416_p5, %p415_p4 }
   0xd   :  { %p418_p7 = pnand %p417_p6, %p411_p3 }
   0xf   :  { %421 = shalt.err (!%p418_p7)
}
  0x10   :  { %s449_s25 = smov 64   ;;  %s450_s26 = smov 4  }
  0x11   :  { %26 = dma.hbm_to_vmem [thread:$0]  %s594_s2, 1024, %s21_s16, [#allocation3], %s449_s25, %s449_s25, %s450_s26  }
  0x12   :  { %444 = dma.done.wait [#allocation3], 1024  }
  0x13   :  { %445 = vsyncadd [#allocation3], 4294966272  ;;  %v451_v0 = vmov 2   ;;  %v452_v1 = vmov 0   ;;  %v453_v2 = vmov 0.0   ;;  %v512_v3 = vld [vmem:[%s592_s0] sm:$0xff]  ;;  %v34_v27 = vlaneseq }
  0x14   :  { %372 = vset.pattern.permute.xlu1 %v451_v0  ;;  %370 = vset.pattern.permute.xlu0 %v452_v1  ;;  %v454_v4 = vmov 3   ;;  %v455_v5 = vmov 1   ;;  %v456_v6 = vmov 4   ;;  %v457_v7 = vmov 5   ;;  %v388_v10 = vld [vmem:[#allocation2] sm:$0xff]   ;;  %v389_v13 = vld [vmem:[#allocation2 + $0x8] sm:$0xff]  }
  0x15   :  { %328 = vmatprep.subr.bf16.mxu0 %v453_v2  ;;  %51 = vperm.xlu1 %372, %v512_v3   ;;  %v458_v8 = vmov 6   ;;  %v459_v9 = vmov 8   ;;  %v460_v11 = vmov 7   ;;  %v461_v12 = vmov 11   ;;  %v390_v16 = vld [vmem:[#allocation2 + $0x10] sm:$0xff]   ;;  %v391_v18 = vld [vmem:[#allocation2 + $0x18] sm:$0xff]  }
  0x16   :  { %37 = vperm.xlu0 %370, %v512_v3   ;;  %329 = vmatpush3.bf16.msra.mxu0 %v388_v10  ;;  %v462_v14 = vmov 9   ;;  %v463_v15 = vmov 14   ;;  %v464_v17 = vmov 10   ;;  %v465_v19 = vmov 12   ;;  %v392_v20 = vld [vmem:[#allocation2 + $0x20] sm:$0xff]   ;;  %v393_v21 = vld [vmem:[#allocation2 + $0x28] sm:$0xff]  }
  0x17   :  { %330 = vmatprep.subr.bf16.mxu0 %v453_v2  ;;  %v466_v22 = vmov 13   ;;  %v394_v23 = vld [vmem:[#allocation2 + $0x30] sm:$0xff]   ;;  %v467_v24 = vmov 15   ;;  %v395_v25 = vld [vmem:[#allocation2 + $0x38] sm:$0xff]   ;;  %vm468_vm0 = vmmov 0   ;;  %v253_v26 = vld [vmem:[%s593_s1] sm:$0xff] }
  0x18   :  { %344 = vmatprep.mubr.msk.bf16.mxu0 %vm468_vm0, %v453_v2  ;;  %v543_v28 = vand.u32 127, %v34_v27  ;;  %s469_s6 = smov [#allocation5]  }
  0x19   :  { %373 = vset.pattern.permute.xlu1 %v454_v4  ;;  %s285_s7 = sshll.u32 %s469_s6, 4  ;;  %s286_s7 = int_to_ptr.vmem [resolvable:$true] %s285_s7 }
  0x1a   :  { %371 = vset.pattern.permute.xlu0 %v455_v5  ;;  %58 = vperm.xlu1 %373, %v512_v3   ;;  %p427_p9 = scmp.lt.s32.totalorder %s286_s7, %s286_s7 }
  0x1b   :  { %44 = vperm.xlu0 %371, %v512_v3   ;;  %331 = vmatpush3.bf16.msra.mxu0 %v389_v13 }
  0x1c   :  { %332 = vmatprep.subr.bf16.mxu0 %v453_v2 }
  0x1e   :  { %374 = vset.pattern.permute.xlu1 %v456_v6 }
  0x1f   :  { %375 = vset.pattern.permute.xlu0 %v457_v7  ;;  %65 = vperm.xlu1 %374, %v512_v3  }
  0x20   :  { %72 = vperm.xlu0 %375, %v512_v3   ;;  %333 = vmatpush3.bf16.msra.mxu0 %v390_v16  ;;  %v318_v16 = vld [vmem:[%s595_s3] ss:$0 sm:$0xff]  ;;  %s422_s3 = scalar_lea.vmem %s286_s7, 128 }
  0x21   :  { %334 = vmatprep.subr.bf16.mxu0 %v453_v2  ;;  %p423_p8 = scmp.ne.s32.totalorder %s286_s7, %s422_s3  ;;  %p428_p10 = scmp.lt.s32.totalorder %s422_s3, %s422_s3 }
  0x23   :  { %376 = vset.pattern.permute.xlu1 %v458_v8  ;;  %p429_p11 = por %p428_p10, %p427_p9 }
  0x24   :  { %378 = vset.pattern.permute.xlu0 %v459_v9  ;;  %79 = vperm.xlu1 %376, %v512_v3  }
  0x25   :  { %93 = vperm.xlu0 %378, %v512_v3   ;;  %335 = vmatpush3.bf16.msra.mxu0 %v391_v18  ;;  %p430_p12 = pnand %p429_p11, %p423_p8 }
  0x26   :  { %336 = vmatprep.subr.bf16.mxu0 %v453_v2 }
  0x28   :  { %377 = vset.pattern.permute.xlu1 %v460_v11 }
  0x29   :  { %381 = vset.pattern.permute.xlu0 %v461_v12  ;;  %86 = vperm.xlu1 %377, %v512_v3  }
  0x2a   :  { %114 = vperm.xlu0 %381, %v512_v3   ;;  %337 = vmatpush3.bf16.msra.mxu0 %v392_v20 }
  0x2b   :  { %338 = vmatprep.subr.bf16.mxu0 %v453_v2 }
  0x2d   :  { %379 = vset.pattern.permute.xlu1 %v462_v14 }
  0x2e   :  { %384 = vset.pattern.permute.xlu0 %v463_v15  ;;  %100 = vperm.xlu1 %379, %v512_v3  }
  0x2f   :  { %135 = vperm.xlu0 %384, %v512_v3   ;;  %339 = vmatpush3.bf16.msra.mxu0 %v393_v21 }
  0x30   :  { %340 = vmatprep.subr.bf16.mxu0 %v453_v2 }
  0x32   :  { %380 = vset.pattern.permute.xlu1 %v464_v17 }
  0x33   :  { %387 = vset.pattern.permute.xlu0 %v452_v1  ;;  %107 = vperm.xlu1 %380, %v512_v3  }
  0x34   :  { %341 = vmatpush3.bf16.msra.mxu0 %v394_v23 }
  0x35   :  { %342 = vmatprep.subr.bf16.mxu0 %v453_v2 }
  0x37   :  { %382 = vset.pattern.permute.xlu1 %v465_v19 }
  0x38   :  { %121 = vperm.xlu1 %382, %v512_v3   ;;  %343 = vmatpush3.bf16.msra.mxu0 %v395_v25 }
  0x3c   :  { %383 = vset.pattern.permute.xlu1 %v466_v22 }
  0x3d   :  { %128 = vperm.xlu1 %383, %v512_v3  }
  0x41   :  { %385 = vset.pattern.permute.xlu1 %v467_v24 }
  0x42   :  { %142 = vperm.xlu1 %385, %v512_v3  }
  0x46   :  { %386 = vset.pattern.permute.xlu1 %v452_v1 }
  0x47   :  { %256 = vperm.xlu1 %386, %v253_v26  }
  0x94   :  { %v52_v29 = vpop.permute.xlu1 %51 }
  0x95   :  { %v38_v30 = vpop.permute.xlu0 %37  ;;  %vm53_vm2 = vcmp.eq.s32.totalorder %v52_v29, %v543_v28 }
  0x96   :  { %vm39_vm1 = vcmp.eq.s32.totalorder %v38_v30, %v543_v28  ;;  %v296_v36 = vsel %vm53_vm2, 1.0, %v453_v2 }
  0x97   :  { %v294_v31 = vsel %vm39_vm1, 1.0, %v453_v2 }
  0x99   :  { %v59_v32 = vpop.permute.xlu1 %58 }
  0x9a   :  { %v45_v33 = vpop.permute.xlu0 %44  ;;  %vm60_vm4 = vcmp.eq.s32.totalorder %v59_v32, %v543_v28 }
  0x9b   :  { %vm46_vm3 = vcmp.eq.s32.totalorder %v45_v33, %v543_v28  ;;  %v297_v40 = vsel %vm60_vm4, 1.0, %v453_v2 }
  0x9c   :  { %v295_v34 = vsel %vm46_vm3, 1.0, %v453_v2 }
  0x9d   :  { %v49_v35 = vadd.f32 %v295_v34, %v294_v31 }
  0x9e   :  { %v66_v38 = vpop.permute.xlu1 %65 }
  0x9f   :  { %v56_v37 = vadd.f32 %v296_v36, %v49_v35  ;;  %v73_v39 = vpop.permute.xlu0 %72  ;;  %vm67_vm5 = vcmp.eq.s32.totalorder %v66_v38, %v543_v28 }
  0xa0   :  { %vm74_vm6 = vcmp.eq.s32.totalorder %v73_v39, %v543_v28  ;;  %v298_v42 = vsel %vm67_vm5, 1.0, %v453_v2 }
  0xa1   :  { %v63_v41 = vadd.f32 %v297_v40, %v56_v37  ;;  %v299_v44 = vsel %vm74_vm6, 1.0, %v453_v2 }
  0xa3   :  { %v70_v43 = vadd.f32 %v298_v42, %v63_v41  ;;  %v80_v45 = vpop.permute.xlu1 %79 }
  0xa4   :  { %vm81_vm7 = vcmp.eq.s32.totalorder %v80_v45, %v543_v28  ;;  %v94_v48 = vpop.permute.xlu0 %93 }
  0xa5   :  { %v77_v46 = vadd.f32 %v299_v44, %v70_v43  ;;  %v300_v47 = vsel %vm81_vm7, 1.0, %v453_v2  ;;  %vm95_vm9 = vcmp.eq.s32.totalorder %v94_v48, %v543_v28 }
  0xa6   :  { %v302_v53 = vsel %vm95_vm9, 1.0, %v453_v2 }
  0xa7   :  { %v84_v50 = vadd.f32 %v300_v47, %v77_v46 }
  0xa8   :  { %v87_v49 = vpop.permute.xlu1 %86 }
  0xa9   :  { %vm88_vm8 = vcmp.eq.s32.totalorder %v87_v49, %v543_v28  ;;  %v115_v57 = vpop.permute.xlu0 %114 }
  0xaa   :  { %v301_v51 = vsel %vm88_vm8, 1.0, %v453_v2  ;;  %vm116_vm12 = vcmp.eq.s32.totalorder %v115_v57, %v543_v28 }
  0xab   :  { %v91_v52 = vadd.f32 %v301_v51, %v84_v50  ;;  %v305_v62 = vsel %vm116_vm12, 1.0, %v453_v2 }
  0xad   :  { %v101_v54 = vpop.permute.xlu1 %100  ;;  %v98_v55 = vadd.f32 %v302_v53, %v91_v52 }
  0xae   :  { %vm102_vm10 = vcmp.eq.s32.totalorder %v101_v54, %v543_v28  ;;  %v136_v0 = vpop.permute.xlu0 %135 }
  0xaf   :  { %v303_v56 = vsel %vm102_vm10, 1.0, %v453_v2  ;;  %vm137_vm14 = vcmp.eq.s32.totalorder %v136_v0, %v543_v28 }
  0xb0   :  { %v105_v59 = vadd.f32 %v303_v56, %v98_v55  ;;  %v308_v7 = vsel %vm137_vm14, 1.0, %v453_v2 }
  0xb2   :  { %v108_v58 = vpop.permute.xlu1 %107 }
  0xb3   :  { %vm109_vm11 = vcmp.eq.s32.totalorder %v108_v58, %v543_v28 }
  0xb4   :  { %v304_v60 = vsel %vm109_vm11, 1.0, %v453_v2 }
  0xb5   :  { %v112_v61 = vadd.f32 %v304_v60, %v105_v59 }
  0xb7   :  { %v122_v63 = vpop.permute.xlu1 %121  ;;  %v119_v1 = vadd.f32 %v305_v62, %v112_v61 }
  0xb8   :  { %vm123_vm13 = vcmp.eq.s32.totalorder %v122_v63, %v543_v28 }
  0xb9   :  { %v306_v3 = vsel %vm123_vm13, 1.0, %v453_v2 }
  0xba   :  { %v126_v5 = vadd.f32 %v306_v3, %v119_v1 }
  0xbc   :  { %v129_v4 = vpop.permute.xlu1 %128 }
  0xbd   :  { %vm130_vm15 = vcmp.eq.s32.totalorder %v129_v4, %v543_v28 }
  0xbe   :  { %v307_v6 = vsel %vm130_vm15, 1.0, %v453_v2 }
  0xbf   :  { %v133_v8 = vadd.f32 %v307_v6, %v126_v5 }
  0xc1   :  { %v140_v9 = vadd.f32 %v308_v7, %v133_v8  ;;  %v143_v10 = vpop.permute.xlu1 %142 }
  0xc2   :  { %vm144_vm0 = vcmp.eq.s32.totalorder %v143_v10, %v543_v28 }
  0xc3   :  { %v309_v11 = vsel %vm144_vm0, 1.0, %v453_v2 }
  0xc4   :  { %v147_v12 = vadd.f32 %v309_v11, %v140_v9 }
  0xc6   :  { %v148_v13 = vpack.c.bf16 %v147_v12, %v147_v12  ;;  %v257_v14 = vpop.permute.xlu1 %256 }
  0xc8   :  { %345 = vmatmul.mubr.bf16.vlgmr.msra.gmra.mrb[0].mxu0 %v148_v13 }
 0x19b   :  { %v247_v15 = vpop.f32.mrb[0].mxu0 }
 0x19c   :  { %v259_v17 = vmul.f32 %v257_v14, %v247_v15  ;;  %v346_v18 = vpop.f32.mrb[1].mxu0 }
 0x19d   :  { %v250_v19 = vpop.f32.mrb[2].mxu0 }
 0x19e   :  { %v347_v20 = vpop.f32.mrb[3].mxu0  ;;  %v267_v21 = vadd.f32 %v318_v16, %v259_v17 }
 0x1a0   :  { %268 = vmax.xlane.f32.xlu0 %v267_v21 }
 0x22d   :  { %v269_v22 = vpop.xlane.xlu0 %268 }
 0x22e   :  { %v270_v23 = vsub.f32 %v267_v21, %v269_v22 }
 0x230   :  { %v271_v24 = vmul.f32 1.442695, %v270_v23 }
 0x232   :  { %396 = vpow2.f32 %v271_v24 }
 0x23c   :  { %v397_v2 = vpop.eup %396 }
 0x23d   :  { %273 = vadd.xlane.f32.xlu1 %v397_v2 }
 0x2ca   :  { %v274_v25 = vpop.xlane.xlu1 %273 }
 0x2cb   :  { %398 = vlog2.f32 %v274_v25 }
 0x2d5   :  { %v399_v26 = vpop.eup %398 }
 0x2d6   :  { %v276_v27 = vmul.f32 0.6931472, %v399_v26 }
 0x2d8   :  { %v277_v28 = vsub.f32 %v270_v23, %v276_v27 }
 0x2da   :  { %278 = vst [vmem:[#allocation5] sm:$0xff] %v277_v28 }
 0x2db   :  { %433 = shalt.err (!%p430_p12)
}
 0x2dc   :  { %s434_s10 = scalar_lea.hbm %s596_s4, 128 }
 0x2dd   :  { %p435_p13 = scmp.ne.s32.totalorder %s596_s4, %s434_s10  ;;  %p438_p0 = scmp.lt.u32.totalorder %s434_s10, %s596_s4 }
 0x2df   :  { %p440_p1 = pnand %p438_p0, %p435_p13 }
 0x2e1   :  { %443 = shalt.err (!%p440_p1)
}
 0x2e2   :  { %288 = dma.vmem_to_hbm [thread:$0]  %s286_s7, 128, %s596_s4, [#allocation4]  }
 0x2e3   :  { %446 = dma.done.wait [#allocation4], 128  }
 0x2e4   :  { %447 = vsyncadd [#allocation4], 4294967168 }
 0x2e5   :  { %292 = vsyncpa [#allocation3], 1 }
 0x2e6   :  { %293 = vsyncpa [#allocation4], 1 }

</bundles_post_ra>
